<compile_context>
chip_gen: v5e
topology: v5e:2x2
jax: 0.10.0
libtpu: 0.0.40
codegen_flags: <defaults>
</compile_context>

<pallas_src>
import functools

import jax
import jax.numpy as jnp
from jax.experimental import pallas as pl
from jax.experimental.pallas import tpu as pltpu


def _round_up(n, m):
    return ((n + m - 1) // m) * m


def _mlp_kernel(xt_ref, w1t_ref, b1_ref, w2t_ref, b2_ref, w3t_ref, b3_ref, o_ref):
    cdt = w1t_ref.dtype                      # MXU input dtype (bf16 or f32)
    xt = xt_ref[...]                         # (F, tb), batch on lanes

    # fc1 + ReLU: (64, 13) x (13, tb) -> (64, tb); f32 accumulate/epilogue.
    h1 = jnp.dot(w1t_ref[...], xt, preferred_element_type=jnp.float32)
    h1 = jnp.maximum(h1 + b1_ref[...], 0.0).astype(cdt)   # bias (64,1) bcast over lanes

    # fc2 + ReLU: (32, 64) x (64, tb) -> (32, tb)
    h2 = jnp.dot(w2t_ref[...], h1, preferred_element_type=jnp.float32)
    h2 = jnp.maximum(h2 + b2_ref[...], 0.0).astype(cdt)

    # fc3: (1, 32) x (32, tb) -> (1, tb); lane-dense output row (batch on lanes).
    y = jnp.dot(w3t_ref[...], h2, preferred_element_type=jnp.float32)
    o_ref[...] = y + b3_ref[...]             # (1, tb) + (1, 1)


@functools.partial(jax.jit, static_argnames=("tile_b",))
def tabnet_forward(x, params, *, tile_b=8192):
    """x: (B, 13) float.  params: w1t (64,13), b1 (64,1), w2t (32,64), b2 (32,1),
    w3t (1,32), b3 (1,1); weights may be bf16, biases f32.  Returns (B, 1) f32."""
    B, F = x.shape
    w1t, b1, w2t, b2, w3t, b3 = (params[k] for k in ("w1t", "b1", "w2t", "b2", "w3t", "b3"))
    cdtype = w1t.dtype

    # Tile selection: multiple of 128 (Mosaic lane legality), large by default to
    # amortize per-step overhead, capped so small B doesn't over-pad and so
    # mid-size B still yields >= 2 grid steps (v7x megacore split).
    tile_b = max(128, (int(tile_b) // 128) * 128)
    b128 = _round_up(max(B, 1), 128)
    tb = min(tile_b, b128)
    if b128 >= 256 and tb > b128 // 2:
        tb = _round_up(b128 // 2, 128)
    b_pad = _round_up(B, tb)
    num_tiles = b_pad // tb

    # Feature-major x: transpose + (optional) bf16 cast + lane-pad fuse into one
    # XLA pass over x; the kernel then streams contiguous (13, tb) bf16 slabs.
    xt = x.T                                       # (F, B)
    if xt.dtype != cdtype:
        xt = xt.astype(cdtype)
    if b_pad != B:
        xt = jnp.pad(xt, ((0, 0), (0, b_pad - B)))

    const = lambda a: pl.BlockSpec(a.shape, lambda i: (0,) * a.ndim)

    out_row = pl.pallas_call(
        _mlp_kernel,
        out_shape=jax.ShapeDtypeStruct((1, b_pad), jnp.float32),
        grid=(num_tiles,),
        in_specs=[
            pl.BlockSpec((F, tb), lambda i: (0, i)),        # x^T: tiled over batch lanes
            const(w1t), const(b1), const(w2t), const(b2),   # weights: VMEM-resident
            const(w3t), const(b3),
        ],
        out_specs=pl.BlockSpec((1, tb), lambda i: (0, i)),  # lane-dense output row
        compiler_params=pltpu.CompilerParams(
            dimension_semantics=("parallel",),              # megacore split on v7x
        ),
    )(xt, w1t, b1, w2t, b2, w3t, b3)

    return out_row[0, :B].reshape(B, 1)


def init_params(key, *, weight_dtype=jnp.bfloat16):
    """Mimics nn.Linear default init U(-1/sqrt(fan_in), 1/sqrt(fan_in)).
    Weights kept in torch's (out, in) layout (already transposed for the
    batch-on-lanes kernel); biases stored as column vectors (out, 1)."""
    ks = jax.random.split(key, 6)

    def linear(kw, kb, fan_in, fan_out):
        bound = 1.0 / jnp.sqrt(jnp.float32(fan_in))
        w = jax.random.uniform(kw, (fan_out, fan_in), jnp.float32, -bound, bound)
        b = jax.random.uniform(kb, (fan_out, 1), jnp.float32, -bound, bound)
        return w.astype(weight_dtype), b

    w1t, b1 = linear(ks[0], ks[1], 13, 64)
    w2t, b2 = linear(ks[2], ks[3], 64, 32)
    w3t, b3 = linear(ks[4], ks[5], 32, 1)
    return dict(w1t=w1t, b1=b1, w2t=w2t, b2=b2, w3t=w3t, b3=b3)


def _reference(x, p):
    """Same math as the kernel (including bf16 rounding of MXU inputs), plain JAX."""
    f32 = jnp.float32
    cdt = p["w1t"].dtype
    xc = x.astype(cdt).astype(f32)
    h1 = jnp.maximum(xc @ p["w1t"].astype(f32).T + p["b1"].T, 0.0)
    h1 = h1.astype(cdt).astype(f32)
    h2 = jnp.maximum(h1 @ p["w2t"].astype(f32).T + p["b2"].T, 0.0)
    h2 = h2.astype(cdt).astype(f32)
    return h2 @ p["w3t"].astype(f32).T + p["b3"].T


if __name__ == "__main__":
    key = jax.random.PRNGKey(0)
    kx, kp = jax.random.split(key)
    B = 8
    x = jax.random.normal(kx, (B, 13), jnp.float32)
    params = init_params(kp)          # bf16 weights, f32 biases

    out = jax.block_until_ready(tabnet_forward(x, params))
    ref = _reference(x, params)

    assert out.shape == (B, 1), out.shape
    assert jnp.allclose(out, ref, atol=1e-3, rtol=1e-3), float(jnp.max(jnp.abs(out - ref)))
    print("KERNEL_OK")
</pallas_src>

<mosaic_0001>
module attributes {stable_mosaic.version = 11 : i64} {
  func.func @_mlp_kernel(%arg0: i32, %arg1: memref<13x128xbf16, #tpu.memory_space<vmem>>, %arg2: memref<64x13xbf16, #tpu.memory_space<vmem>>, %arg3: memref<64x1xf32, #tpu.memory_space<vmem>>, %arg4: memref<32x64xbf16, #tpu.memory_space<vmem>>, %arg5: memref<32x1xf32, #tpu.memory_space<vmem>>, %arg6: memref<1x32xbf16, #tpu.memory_space<vmem>>, %arg7: memref<1x1xf32, #tpu.memory_space<vmem>>, %arg8: memref<1x128xf32, #tpu.memory_space<vmem>>) attributes {dimension_semantics = [#tpu.dimension_semantics<parallel>], iteration_bounds = array<i64: 1>, scalar_prefetch = 0 : i64, scratch_operands = 0 : i64, tpu.core_type = #tpu.core_type<tc>, window_params = [{transform_indices = @transform_0, window_bounds = array<i64: 13, 128>}, {pipeline_mode = #tpu.pipeline_mode<synchronous>, transform_indices = @transform_1, window_bounds = array<i64: 64, 13>}, {pipeline_mode = #tpu.pipeline_mode<synchronous>, transform_indices = @transform_2, window_bounds = array<i64: 64, 1>}, {pipeline_mode = #tpu.pipeline_mode<synchronous>, transform_indices = @transform_3, window_bounds = array<i64: 32, 64>}, {pipeline_mode = #tpu.pipeline_mode<synchronous>, transform_indices = @transform_4, window_bounds = array<i64: 32, 1>}, {pipeline_mode = #tpu.pipeline_mode<synchronous>, transform_indices = @transform_5, window_bounds = array<i64: 1, 32>}, {pipeline_mode = #tpu.pipeline_mode<synchronous>, transform_indices = @transform_6, window_bounds = array<i64: 1, 1>}, {transform_indices = @transform_7, window_bounds = array<i64: 1, 128>}]} {
    %c0 = arith.constant 0 : index
    %c0_0 = arith.constant 0 : index
    %0 = vector.load %arg1[%c0, %c0_0] : memref<13x128xbf16, #tpu.memory_space<vmem>>, vector<13x128xbf16>
    %c0_1 = arith.constant 0 : index
    %c0_2 = arith.constant 0 : index
    %1 = vector.load %arg2[%c0_1, %c0_2] : memref<64x13xbf16, #tpu.memory_space<vmem>>, vector<64x13xbf16>
    %cst = arith.constant dense<0.000000e+00> : vector<64x128xf32>
    %2 = tpu.matmul %1, %0, %cst {dimension_numbers = #tpu.dot_dimension_numbers<[1], [0], [0], [1], [0, 0, 1, 1], [], []>} : vector<64x13xbf16>, vector<13x128xbf16>, vector<64x128xf32> -> vector<64x128xf32>
    %c0_3 = arith.constant 0 : index
    %c0_4 = arith.constant 0 : index
    %3 = vector.load %arg3[%c0_3, %c0_4] : memref<64x1xf32, #tpu.memory_space<vmem>>, vector<64x1xf32>
    %4 = vector.broadcast %3 : vector<64x1xf32> to vector<64x128xf32>
    %5 = arith.addf %2, %4 : vector<64x128xf32>
    %cst_5 = arith.constant 0.000000e+00 : f32
    %6 = vector.broadcast %cst_5 : f32 to vector<64x128xf32>
    %7 = arith.maximumf %5, %6 : vector<64x128xf32>
    %8 = arith.truncf %7 : vector<64x128xf32> to vector<64x128xbf16>
    %c0_6 = arith.constant 0 : index
    %c0_7 = arith.constant 0 : index
    %9 = vector.load %arg4[%c0_6, %c0_7] : memref<32x64xbf16, #tpu.memory_space<vmem>>, vector<32x64xbf16>
    %cst_8 = arith.constant dense<0.000000e+00> : vector<32x128xf32>
    %10 = tpu.matmul %9, %8, %cst_8 {dimension_numbers = #tpu.dot_dimension_numbers<[1], [0], [0], [1], [0, 0, 1, 1], [], []>} : vector<32x64xbf16>, vector<64x128xbf16>, vector<32x128xf32> -> vector<32x128xf32>
    %c0_9 = arith.constant 0 : index
    %c0_10 = arith.constant 0 : index
    %11 = vector.load %arg5[%c0_9, %c0_10] : memref<32x1xf32, #tpu.memory_space<vmem>>, vector<32x1xf32>
    %12 = vector.broadcast %11 : vector<32x1xf32> to vector<32x128xf32>
    %13 = arith.addf %10, %12 : vector<32x128xf32>
    %cst_11 = arith.constant 0.000000e+00 : f32
    %14 = vector.broadcast %cst_11 : f32 to vector<32x128xf32>
    %15 = arith.maximumf %13, %14 : vector<32x128xf32>
    %16 = arith.truncf %15 : vector<32x128xf32> to vector<32x128xbf16>
    %c0_12 = arith.constant 0 : index
    %c0_13 = arith.constant 0 : index
    %17 = vector.load %arg6[%c0_12, %c0_13] : memref<1x32xbf16, #tpu.memory_space<vmem>>, vector<1x32xbf16>
    %cst_14 = arith.constant dense<0.000000e+00> : vector<1x128xf32>
    %18 = tpu.matmul %17, %16, %cst_14 {dimension_numbers = #tpu.dot_dimension_numbers<[1], [0], [0], [1], [0, 0, 1, 1], [], []>} : vector<1x32xbf16>, vector<32x128xbf16>, vector<1x128xf32> -> vector<1x128xf32>
    %c0_15 = arith.constant 0 : index
    %c0_16 = arith.constant 0 : index
    %19 = vector.load %arg7[%c0_15, %c0_16] : memref<1x1xf32, #tpu.memory_space<vmem>>, vector<1x1xf32>
    %20 = vector.broadcast %19 : vector<1x1xf32> to vector<1x128xf32>
    %21 = arith.addf %18, %20 : vector<1x128xf32>
    %c0_17 = arith.constant 0 : index
    %c0_18 = arith.constant 0 : index
    %22 = vector.load %arg8[%c0_17, %c0_18] : memref<1x128xf32, #tpu.memory_space<vmem>>, vector<1x128xf32>
    tpu.vector_store %arg8[%c0_17, %c0_18], %21 {strides = array<i32>} : memref<1x128xf32, #tpu.memory_space<vmem>>, vector<1x128xf32>,
    return
  }
  func.func @transform_0(%arg0: i32) -> (i32, i32) {
    %c0_i32 = arith.constant 0 : i32
    %c0_i32_0 = arith.constant 0 : i32
    return %c0_i32, %arg0 : i32, i32
  }
  func.func @transform_1(%arg0: i32) -> (i32, i32) {
    %c0_i32 = arith.constant 0 : i32
    %c0_i32_0 = arith.constant 0 : i32
    %c0_i32_1 = arith.constant 0 : i32
    return %c0_i32, %c0_i32_0 : i32, i32
  }
  func.func @transform_2(%arg0: i32) -> (i32, i32) {
    %c0_i32 = arith.constant 0 : i32
    %c0_i32_0 = arith.constant 0 : i32
    %c0_i32_1 = arith.constant 0 : i32
    return %c0_i32, %c0_i32_0 : i32, i32
  }
  func.func @transform_3(%arg0: i32) -> (i32, i32) {
    %c0_i32 = arith.constant 0 : i32
    %c0_i32_0 = arith.constant 0 : i32
    %c0_i32_1 = arith.constant 0 : i32
    return %c0_i32, %c0_i32_0 : i32, i32
  }
  func.func @transform_4(%arg0: i32) -> (i32, i32) {
    %c0_i32 = arith.constant 0 : i32
    %c0_i32_0 = arith.constant 0 : i32
    %c0_i32_1 = arith.constant 0 : i32
    return %c0_i32, %c0_i32_0 : i32, i32
  }
  func.func @transform_5(%arg0: i32) -> (i32, i32) {
    %c0_i32 = arith.constant 0 : i32
    %c0_i32_0 = arith.constant 0 : i32
    %c0_i32_1 = arith.constant 0 : i32
    return %c0_i32, %c0_i32_0 : i32, i32
  }
  func.func @transform_6(%arg0: i32) -> (i32, i32) {
    %c0_i32 = arith.constant 0 : i32
    %c0_i32_0 = arith.constant 0 : i32
    %c0_i32_1 = arith.constant 0 : i32
    return %c0_i32, %c0_i32_0 : i32, i32
  }
  func.func @transform_7(%arg0: i32) -> (i32, i32) {
    %c0_i32 = arith.constant 0 : i32
    %c0_i32_0 = arith.constant 0 : i32
    return %c0_i32, %arg0 : i32, i32
  }
}

</mosaic_0001>

<bundles_post_ra>
// kernel: tabnet_forward.1
= control target key start
LH: loop header
LB: loop body
LE: loop exit
PB: predicated region body
PF: predicated region fallthrough
CT: control target
= control target key end

     0   :  { %vm125_vm0 = vcmask 1045504   ;;  %vm126_vm1 = vcmask 1046528   ;;  %v321_v2 = vmov 65535   ;;  %v322_v4 = vmov 0   ;;  %s436_s0 = inlined_call_operand.vmem [shape: bf16[13,128], index: 0, kind: input, shape index: {}]   ;;  %s437_s2 = inlined_call_operand.vmem [shape: f32[64,1], index: 2, kind: input, shape index: {}]   ;;  %s438_s6 = inlined_call_operand.<no memory space> [shape: f32[1,1], index: 6, kind: input, shape index: {}]   ;;  %s439_s1 = inlined_call_operand.vmem [shape: bf16[64,13], index: 1, kind: input, shape index: {}]   ;;  %s440_s4 = inlined_call_operand.vmem [shape: f32[32,1], index: 4, kind: input, shape index: {}]   ;;  %s441_s3 = inlined_call_operand.vmem [shape: bf16[32,64], index: 3, kind: input, shape index: {}]   ;;  %s442_s5 = inlined_call_operand.vmem [shape: bf16[1,32], index: 5, kind: input, shape index: {}]   ;;  %s443_s7 = inlined_call_operand.vmem [shape: f32[1,128], index: 7, kind: output, shape index: {}]  }
   0x1   :  { %v291_v0 = vld [vmem:[%s436_s0] sm:$0xf]  ;;  %v308_v1 = vld [vmem:[%s436_s0] sm:$0x70]  ;;  %v127_v3 = vsel %vm125_vm0, 4294967295, %v321_v2  ;;  %318 = vset.pattern.permute.xlu0 %v322_v4  ;;  %319 = vset.pattern.permute.xlu1 %v322_v4  ;;  %v12_v5 = vstv %s438_s6  ;;  %v45_v8 = vld [vmem:[%s437_s2 + $0x30] sm:$0xff] }
   0x2   :  { %v292_v6 = vor.u32 %v308_v1, %v291_v0  ;;  %v128_v7 = vsel %vm126_vm1, %v127_v3, 0  ;;  %320 = vset.pattern.permute.xlu2 %v322_v4  ;;  %79 = vperm.xlu0 %318, %v45_v8   ;;  %v43_v9 = vld [vmem:[%s437_s2 + $0x20] sm:$0xff]  ;;  %13 = vst [vmem:[#allocation2] sm:$0x1] %v12_v5  ;;  %v311_v11 = vld [vmem:[%s439_s1 + $0x10] sm:$0xff]  ;;  %vm112_vm2 = vcmask 105472  }
   0x3   :  { %69 = vperm.xlu1 %319, %v43_v9   ;;  %v309_v12 = vld [vmem:[%s439_s1] sm:$0xff]  ;;  %v41_v13 = vld [vmem:[%s437_s2 + $0x10] sm:$0xff]  ;;  %v46_v14 = vld [vmem:[%s437_s2 + $0x38] sm:$0xff]  ;;  %vm211_vm3 = vcmask 523264   ;;  %vm251_vm4 = vcmask 261120  }
   0x4   :  { %v130_v10 = vand.u32 %v292_v6, %v128_v7  ;;  %59 = vperm.xlu2 %320, %v41_v13   ;;  %v44_v15 = vld [vmem:[%s437_s2 + $0x28] sm:$0xff]  ;;  %v42_v16 = vld [vmem:[%s437_s2 + $0x18] sm:$0xff]  ;;  %v39_v17 = vld [vmem:[%s437_s2] sm:$0xff] }
   0x5   :  { %v40_v18 = vld [vmem:[%s437_s2 + $0x8] sm:$0xff]  ;;  %v179_v19 = vld [vmem:[%s440_s4 + $0x10] sm:$0xff]  ;;  %v312_v20 = vld [vmem:[%s439_s1 + $0x18] sm:$0xff] }
   0x6   :  { %315 = vmatpush.bf16.msra.mxu3 %v130_v10  ;;  %139 = vmatpush.bf16.msra.mxu0 %v130_v10  ;;  %v310_v21 = vld [vmem:[%s439_s1 + $0x8] sm:$0xff]  ;;  %v180_v22 = vld [vmem:[%s440_s4 + $0x18] sm:$0xff]  ;;  %v177_v23 = vld [vmem:[%s440_s4] sm:$0xff] }
   0x7   :  { %v178_v24 = vld [vmem:[%s440_s4 + $0x8] sm:$0xff]  ;;  %v313_v62 = vld [vmem:[%s441_s3] sm:$0xff] }
   0x8   :  { %v314_v63 = vld [vmem:[%s441_s3 + $0x8] sm:$0xff] }
   0x9   :  { %295 = vmatmul.msk.bf16.vlgmr.msra.gmra.mxu3 %vm112_vm2, %v311_v11  ;;  %293 = vmatmul.msk.bf16.vlgmr.msra.gmra.mxu0 %vm112_vm2, %v309_v12  ;;  %v244_v25 = vld [vmem:[#allocation2] sm:$0x1] }
   0xa   :  { %84 = vperm.xlu0 %318, %v46_v14  }
   0xb   :  { %74 = vperm.xlu1 %319, %v44_v15  }
   0xc   :  { %64 = vperm.xlu2 %320, %v42_v16  }
  0x12   :  { %49 = vperm.xlu0 %318, %v39_v17  }
  0x13   :  { %54 = vperm.xlu1 %319, %v40_v18   ;;  %v243_v18 = vld [vmem:[%s442_s5] sm:$0x1] }
  0x14   :  { %193 = vperm.xlu2 %320, %v179_v19  }
  0x19   :  { %296 = vmatmul.msk.bf16.gmra.mxu3 %vm112_vm2, %v312_v20  ;;  %294 = vmatmul.msk.bf16.gmra.mxu0 %vm112_vm2, %v310_v21 }
  0x1a   :  { %198 = vperm.xlu0 %318, %v180_v22  }
  0x1b   :  { %183 = vperm.xlu1 %319, %v177_v23  }
  0x1c   :  { %188 = vperm.xlu2 %320, %v178_v24  }
  0x22   :  { %247 = vperm.xlu0 %318, %v244_v25  }
  0x5e   :  { %v60_v34 = vpop.permute.xlu2 %59 }
  0x66   :  { %v65_v45 = vpop.permute.xlu2 %64 }
  0x6e   :  { %v194_v2 = vpop.permute.xlu2 %193 }
  0x74   :  { %v80_v31 = vpop.permute.xlu0 %79 }
  0x75   :  { %v70_v30 = vpop.permute.xlu1 %69 }
  0x76   :  { %v189_v4 = vpop.permute.xlu2 %188 }
  0x7c   :  { %v85_v36 = vpop.permute.xlu0 %84 }
  0x7d   :  { %v75_v35 = vpop.permute.xlu1 %74 }
  0x84   :  { %v50_v51 = vpop.permute.xlu0 %49 }
  0x85   :  { %v55_v50 = vpop.permute.xlu1 %54 }
  0x86   :  { %v141_v26 = vpop.f32.mrf.mxu0 }
  0x87   :  { %v142_v53 = vadd.f32 %v141_v26, %v50_v51 }
  0x89   :  { %v161_v58 = vmax.f32 %v142_v53, 0.0 }
  0x8c   :  { %v151_v27 = vpop.f32.mrf.mxu3  ;;  %v199_v6 = vpop.permute.xlu0 %198 }
  0x8d   :  { %v152_v42 = vadd.f32 %v151_v27, %v70_v30  ;;  %v184_v10 = vpop.permute.xlu1 %183 }
  0x8e   :  { %v143_v28 = vpop.f32.mrf.mxu0 }
  0x8f   :  { %v165_v52 = vmax.f32 %v152_v42, 0.0  ;;  %v144_v54 = vadd.f32 %v143_v28, %v55_v50 }
  0x91   :  { %v162_v59 = vmax.f32 %v144_v54, 0.0 }
  0x93   :  { %v169_v61 = vpack.c.bf16 %v162_v59, %v161_v58 }
  0x94   :  { %v153_v29 = vpop.f32.mrf.mxu3  ;;  %v248_v19 = vpop.permute.xlu0 %247 }
  0x95   :  { %v154_v39 = vadd.f32 %v153_v29, %v75_v35  ;;  %v250_v20 = vperm.slane %v248_v19, 0 }
  0x96   :  { %v146_v32 = vpop.f32.mrf.mxu0 }
  0x97   :  { %v166_v46 = vmax.f32 %v154_v39, 0.0  ;;  %v147_v47 = vadd.f32 %v146_v32, %v60_v34 }
  0x99   :  { %v163_v55 = vmax.f32 %v147_v47, 0.0  ;;  %v171_v57 = vpack.c.bf16 %v166_v46, %v165_v52 }
  0x9c   :  { %v156_v33 = vpop.f32.mrf.mxu3 }
  0x9d   :  { %v157_v37 = vadd.f32 %v156_v33, %v80_v31 }
  0x9e   :  { %v148_v41 = vpop.f32.mrf.mxu0 }
  0x9f   :  { %v167_v43 = vmax.f32 %v157_v37, 0.0  ;;  %v149_v48 = vadd.f32 %v148_v41, %v65_v45 }
  0xa1   :  { %v164_v56 = vmax.f32 %v149_v48, 0.0 }
  0xa3   :  { %v170_v60 = vpack.c.bf16 %v164_v56, %v163_v55 }
  0xa4   :  { %v158_v38 = vpop.f32.mrf.mxu3 }
  0xa5   :  { %v159_v40 = vadd.f32 %v158_v38, %v85_v36 }
  0xa7   :  { %v168_v44 = vmax.f32 %v159_v40, 0.0 }
  0xa9   :  { %v172_v49 = vpack.c.bf16 %v168_v44, %v167_v43 }
  0xab   :  { %222 = vmatpush.bf16.msra.mxu1 %v172_v49 }
  0xaf   :  { %223 = vmatpush.bf16.msra.mxu1 %v171_v57 }
  0xb3   :  { %224 = vmatpush.bf16.msra.mxu1 %v170_v60 }
  0xb7   :  { %225 = vmatpush.bf16.msra.mxu1 %v169_v61 }
  0xba   :  { %305 = vmatmul.msk.bf16.vlgmr.msra.gmra.mxu1 %vm211_vm3, %v313_v62 }
  0xca   :  { %306 = vmatmul.msk.bf16.gmra.mxu1 %vm211_vm3, %v314_v63 }
 0x137   :  { %v227_v0 = vpop.f32.mrf.mxu1 }
 0x138   :  { %v228_v11 = vadd.f32 %v227_v0, %v184_v10 }
 0x13a   :  { %v237_v16 = vmax.f32 %v228_v11, 0.0 }
 0x13f   :  { %v229_v1 = vpop.f32.mrf.mxu1 }
 0x140   :  { %v230_v8 = vadd.f32 %v229_v1, %v189_v4 }
 0x142   :  { %v238_v14 = vmax.f32 %v230_v8, 0.0 }
 0x144   :  { %v241_v17 = vpack.c.bf16 %v238_v14, %v237_v16 }
 0x147   :  { %v232_v3 = vpop.f32.mrf.mxu1 }
 0x148   :  { %v233_v5 = vadd.f32 %v232_v3, %v194_v2 }
 0x14a   :  { %v239_v12 = vmax.f32 %v233_v5, 0.0 }
 0x14f   :  { %v234_v7 = vpop.f32.mrf.mxu1 }
 0x150   :  { %v235_v9 = vadd.f32 %v234_v7, %v199_v6 }
 0x152   :  { %v240_v13 = vmax.f32 %v235_v9, 0.0 }
 0x154   :  { %v242_v15 = vpack.c.bf16 %v240_v13, %v239_v12 }
 0x156   :  { %261 = vmatpush.bf16.msra.mxu2 %v242_v15 }
 0x15a   :  { %262 = vmatpush.bf16.msra.mxu2 %v241_v17 }
 0x15d   :  { %307 = vmatmul.msk.bf16.vlgmr.msra.gmra.mxu2 %vm251_vm4, %v243_v18 }
 0x1e0   :  { %v264_v21 = vpop.f32.mrf.mxu2 }
 0x1e1   :  { %v265_v22 = vadd.f32 %v264_v21, %v250_v20 }
 0x1e3   :  { %268 = vst [vmem:[%s443_s7] sm:$0x1] %v265_v22 }
 0x1e8   :  { %v266_v23 = vpop.f32.mrf.mxu2 }

</bundles_post_ra>
